<compile_context>
chip_gen: v7x
topology: tpu7x:2x2x1
jax: 0.10.0
libtpu: 0.0.40
codegen_flags: <defaults>
</compile_context>

<pallas_src>
import functools

import jax
import jax.numpy as jnp
import numpy as np
from jax.experimental import pallas as pl
from jax.experimental.pallas import tpu as pltpu

# ----------------------------- model hyper-params -----------------------------
OUTPUT_SIZE = 16   # vocab size
EMBED_SIZE = 32
HIDDEN_SIZE = 32
N_LAYERS = 2
BATCH = 2
DROPOUT_PROB = 0.0  # identity at prob=0 -> no RNG needed in-kernel


# --------------------------------- kernel -------------------------------------
def _decoder_kernel(n_layers, batch, embed, hidden, out_size,
                    idx_ref, emb_ref, h_ref, c_ref, w_ref, b_ref, wout_ref,
                    logits_ref, h_out_ref, c_out_ref):
    H = hidden
    Dp = max(embed, hidden)  # row offset of w_hh block inside each packed layer weight

    # ---- Embedding lookup: masked select + reduce (exact in f32, bounds-safe).
    emb = emb_ref[...]                                                  # (O, E)
    vocab_iota = jax.lax.broadcasted_iota(jnp.int32, (out_size, embed), 0)
    rows = [
        jnp.sum(jnp.where(vocab_iota == idx_ref[b], emb, 0.0), axis=0, keepdims=True)
        for b in range(batch)
    ]
    x = jnp.concatenate(rows, axis=0)                                   # (B, E)
    # dropout(prob=0.0) == identity

    # ---- Stacked single-step LSTM (packed weights, gate order i,f,o,g).
    for l in range(n_layers):
        din = embed if l == 0 else hidden
        w_l = w_ref[l]                                                  # (Dp+H, 4H)
        b_l = b_ref[l]                                                  # (1, 4H)
        h_prev = h_ref[l]                                               # (B, H)
        c_prev = c_ref[l]                                               # (B, H)

        gates = (
            jnp.dot(x, w_l[:din, :], preferred_element_type=jnp.float32)
            + jnp.dot(h_prev, w_l[Dp:Dp + H, :], preferred_element_type=jnp.float32)
            + b_l
        )                                                               # (B, 4H)

        sig = jax.nn.sigmoid(gates[:, :3 * H])                          # i, f, o in one call
        g_g = jnp.tanh(gates[:, 3 * H:])                                # g
        i_g = sig[:, :H]
        f_g = sig[:, H:2 * H]
        o_g = sig[:, 2 * H:3 * H]

        c_new = f_g * c_prev + i_g * g_g
        h_new = o_g * jnp.tanh(c_new)
        h_out_ref[l] = h_new
        c_out_ref[l] = c_new
        x = h_new  # inter-layer dropout is identity at prob=0

    # ---- fc_out (weight and bias packed into one array: last row is the bias).
    w_out = wout_ref[...]                                               # (H+1, O)
    logits_ref[...] = (
        jnp.dot(x, w_out[:H, :], preferred_element_type=jnp.float32) + w_out[H:, :]
    )


# ----------------------------- one-time packing --------------------------------
def pack_params(params, *, n_layers=N_LAYERS, embed=EMBED_SIZE, hidden=HIDDEN_SIZE):
    """One-time preprocessing (NOT in the decode hot path): transpose weights,
    reorder gates (i,f,g,o) -> (i,f,o,g), pre-sum biases, stack layers."""
    H = hidden
    Dp = max(embed, hidden)

    def reorder(w):  # last dim is 4H in PyTorch order (i,f,g,o) -> (i,f,o,g)
        return jnp.concatenate(
            [w[..., :2 * H], w[..., 3 * H:4 * H], w[..., 2 * H:3 * H]], axis=-1)

    w_blocks, b_blocks = [], []
    for l in range(n_layers):
        din = embed if l == 0 else hidden
        blk = jnp.zeros((Dp + H, 4 * H), jnp.float32)
        blk = blk.at[:din, :].set(reorder(params[f"w_ih_{l}"].T))
        blk = blk.at[Dp:, :].set(reorder(params[f"w_hh_{l}"].T))
        w_blocks.append(blk)
        b_blocks.append(
            reorder((params[f"b_ih_{l}"] + params[f"b_hh_{l}"]).reshape(1, 4 * H)))

    return {
        "emb": params["embedding"].astype(jnp.float32),                  # (O, E)
        "w_stack": jnp.stack(w_blocks),                                  # (L, Dp+H, 4H)
        "b_stack": jnp.stack(b_blocks),                                  # (L, 1, 4H)
        "w_out": jnp.concatenate(
            [params["w_out"].T.astype(jnp.float32),
             params["b_out"].reshape(1, -1).astype(jnp.float32)], axis=0),  # (H+1, O)
    }


# --------------------------------- wrapper ------------------------------------
# TODO(synk): for a full autoregressive decode loop, fuse T steps into one pallas_call
# (weights and (h,c) VMEM-resident, only token ids / logits streamed). The module's
# forward() is a single step, so single-step semantics are kept here.
def simple_decoder_step(token_idx, hidden, cell, packed):
    """One decoder step.

    token_idx: (B,) int32 token indices
    hidden, cell: (n_layers, B, H) float32
    packed: output of pack_params()
    Returns (logits (B, output_size), (hidden', cell')).
    """
    B = token_idx.shape[0]
    L, _, H = hidden.shape
    O, E = packed["emb"].shape

    kernel = functools.partial(_decoder_kernel, L, B, E, H, O)
    vmem = pl.BlockSpec(memory_space=pltpu.MemorySpace.VMEM)
    smem = pl.BlockSpec(memory_space=pltpu.MemorySpace.SMEM)

    logits, h_new, c_new = pl.pallas_call(
        kernel,
        out_shape=(
            jax.ShapeDtypeStruct((B, O), jnp.float32),       # logits
            jax.ShapeDtypeStruct((L, B, H), jnp.float32),    # new hidden
            jax.ShapeDtypeStruct((L, B, H), jnp.float32),    # new cell
        ),
        in_specs=[smem, vmem, vmem, vmem, vmem, vmem, vmem],
        out_specs=(vmem, vmem, vmem),
        # Update the recurrent state in place: hidden -> h_out, cell -> c_out.
        input_output_aliases={2: 1, 3: 2},
    )(token_idx.astype(jnp.int32), packed["emb"], hidden, cell,
      packed["w_stack"], packed["b_stack"], packed["w_out"])
    return logits, (h_new, c_new)


# ------------------------------ param init ------------------------------------
def init_params(key):
    """Deterministic synthetic parameters with PyTorch-style shapes."""
    keys = jax.random.split(key, 4 + 4 * N_LAYERS)
    k_iter = iter(keys)
    s = 1.0 / np.sqrt(HIDDEN_SIZE)
    params = {
        "embedding": jax.random.normal(next(k_iter), (OUTPUT_SIZE, EMBED_SIZE), jnp.float32),
        "w_out": jax.random.uniform(next(k_iter), (OUTPUT_SIZE, HIDDEN_SIZE), jnp.float32, -s, s),
        "b_out": jax.random.uniform(next(k_iter), (OUTPUT_SIZE,), jnp.float32, -s, s),
    }
    for l in range(N_LAYERS):
        in_dim = EMBED_SIZE if l == 0 else HIDDEN_SIZE
        params[f"w_ih_{l}"] = jax.random.uniform(
            next(k_iter), (4 * HIDDEN_SIZE, in_dim), jnp.float32, -s, s)
        params[f"w_hh_{l}"] = jax.random.uniform(
            next(k_iter), (4 * HIDDEN_SIZE, HIDDEN_SIZE), jnp.float32, -s, s)
        params[f"b_ih_{l}"] = jax.random.uniform(
            next(k_iter), (4 * HIDDEN_SIZE,), jnp.float32, -s, s)
        params[f"b_hh_{l}"] = jax.random.uniform(
            next(k_iter), (4 * HIDDEN_SIZE,), jnp.float32, -s, s)
    params["key_remainder"] = next(k_iter)  # unused; keeps split count simple
    return params


# ----------------------------- pure-JAX reference ------------------------------
def reference_step(token_idx, hidden, cell, params):
    x = params["embedding"][token_idx]  # (B, E)
    H = HIDDEN_SIZE
    h_out, c_out = [], []
    for l in range(N_LAYERS):
        gates = (x @ params[f"w_ih_{l}"].T + params[f"b_ih_{l}"]
                 + hidden[l] @ params[f"w_hh_{l}"].T + params[f"b_hh_{l}"])
        i_g = jax.nn.sigmoid(gates[:, 0:H])
        f_g = jax.nn.sigmoid(gates[:, H:2 * H])
        g_g = jnp.tanh(gates[:, 2 * H:3 * H])
        o_g = jax.nn.sigmoid(gates[:, 3 * H:4 * H])
        c_new = f_g * cell[l] + i_g * g_g
        h_new = o_g * jnp.tanh(c_new)
        h_out.append(h_new)
        c_out.append(c_new)
        x = h_new
    logits = x @ params["w_out"].T + params["b_out"]
    return logits, (jnp.stack(h_out), jnp.stack(c_out))


# ---------------------------------- main ---------------------------------------
if __name__ == "__main__":
    key = jax.random.PRNGKey(0)
    k_param, k_idx, k_h, k_c = jax.random.split(key, 4)

    params = init_params(k_param)
    packed = pack_params(params)  # one-time, outside the per-step hot path

    token_idx = jax.random.randint(k_idx, (BATCH,), 0, OUTPUT_SIZE, dtype=jnp.int32)
    hidden = jax.random.normal(k_h, (N_LAYERS, BATCH, HIDDEN_SIZE), jnp.float32)
    cell = jax.random.normal(k_c, (N_LAYERS, BATCH, HIDDEN_SIZE), jnp.float32)

    # Reference first (the kernel aliases hidden/cell buffers).
    ref_logits, (ref_h, ref_c) = reference_step(token_idx, hidden, cell, params)

    step = jax.jit(simple_decoder_step)
    logits, (h_new, c_new) = step(token_idx, hidden, cell, packed)
    jax.block_until_ready((logits, h_new, c_new))

    np.testing.assert_allclose(np.asarray(logits), np.asarray(ref_logits), rtol=1e-5, atol=1e-5)
    np.testing.assert_allclose(np.asarray(h_new), np.asarray(ref_h), rtol=1e-5, atol=1e-5)
    np.testing.assert_allclose(np.asarray(c_new), np.asarray(ref_c), rtol=1e-5, atol=1e-5)

    print("KERNEL_OK")
</pallas_src>

<mosaic_0001>
module attributes {stable_mosaic.version = 11 : i64} {
  func.func @_decoder_kernel(%arg0: memref<2xi32, #tpu.memory_space<smem>>, %arg1: memref<16x32xf32, #tpu.memory_space<vmem>>, %arg2: memref<2x2x32xf32, #tpu.memory_space<vmem>>, %arg3: memref<2x2x32xf32, #tpu.memory_space<vmem>>, %arg4: memref<2x64x128xf32, #tpu.memory_space<vmem>>, %arg5: memref<2x1x128xf32, #tpu.memory_space<vmem>>, %arg6: memref<33x16xf32, #tpu.memory_space<vmem>>, %arg7: memref<2x16xf32, #tpu.memory_space<vmem>>, %arg8: memref<2x2x32xf32, #tpu.memory_space<vmem>>, %arg9: memref<2x2x32xf32, #tpu.memory_space<vmem>>) attributes {dimension_semantics = [], scalar_prefetch = 0 : i64, scratch_operands = 0 : i64, tpu.core_type = #tpu.core_type<tc>} {
    %c0 = arith.constant 0 : index
    %c0_0 = arith.constant 0 : index
    %0 = vector.load %arg1[%c0, %c0_0] : memref<16x32xf32, #tpu.memory_space<vmem>>, vector<16x32xf32>
    %1 = tpu.iota {dimensions = array<i32: 0>} : vector<16x32xi32>
    %c0_1 = arith.constant 0 : index
    %2 = memref.load %arg0[%c0_1] : memref<2xi32, #tpu.memory_space<smem>>
    %3 = vector.broadcast %2 : i32 to vector<16x32xi32>
    %4 = arith.cmpi eq, %1, %3 : vector<16x32xi32>
    %cst = arith.constant 0.000000e+00 : f32
    %5 = vector.broadcast %cst : f32 to vector<16x32xf32>
    %6 = arith.select %4, %0, %5 : vector<16x32xi1>, vector<16x32xf32>
    %cst_2 = arith.constant dense<0.000000e+00> : vector<32xf32>
    %7 = vector.multi_reduction <add>, %6, %cst_2 [0] : vector<16x32xf32> to vector<32xf32>
    %8 = vector.shape_cast %7 : vector<32xf32> to vector<1x32xf32>
    %c1 = arith.constant 1 : index
    %9 = memref.load %arg0[%c1] : memref<2xi32, #tpu.memory_space<smem>>
    %10 = vector.broadcast %9 : i32 to vector<16x32xi32>
    %11 = arith.cmpi eq, %1, %10 : vector<16x32xi32>
    %cst_3 = arith.constant 0.000000e+00 : f32
    %12 = vector.broadcast %cst_3 : f32 to vector<16x32xf32>
    %13 = arith.select %11, %0, %12 : vector<16x32xi1>, vector<16x32xf32>
    %cst_4 = arith.constant dense<0.000000e+00> : vector<32xf32>
    %14 = vector.multi_reduction <add>, %13, %cst_4 [0] : vector<16x32xf32> to vector<32xf32>
    %15 = vector.shape_cast %14 : vector<32xf32> to vector<1x32xf32>
    %16 = tpu.concatenate %8, %15 in 0 : vector<1x32xf32>, vector<1x32xf32> -> vector<2x32xf32>
    %c0_5 = arith.constant 0 : index
    %c0_6 = arith.constant 0 : index
    %c0_7 = arith.constant 0 : index
    %17 = vector.load %arg4[%c0_5, %c0_6, %c0_7] : memref<2x64x128xf32, #tpu.memory_space<vmem>>, vector<1x64x128xf32>
    %18 = vector.shape_cast %17 : vector<1x64x128xf32> to vector<64x128xf32>
    %c0_8 = arith.constant 0 : index
    %c0_9 = arith.constant 0 : index
    %c0_10 = arith.constant 0 : index
    %19 = vector.load %arg5[%c0_8, %c0_9, %c0_10] : memref<2x1x128xf32, #tpu.memory_space<vmem>>, vector<1x1x128xf32>
    %20 = vector.shape_cast %19 : vector<1x1x128xf32> to vector<1x128xf32>
    %c0_11 = arith.constant 0 : index
    %c0_12 = arith.constant 0 : index
    %c0_13 = arith.constant 0 : index
    %21 = vector.load %arg2[%c0_11, %c0_12, %c0_13] : memref<2x2x32xf32, #tpu.memory_space<vmem>>, vector<1x2x32xf32>
    %22 = vector.shape_cast %21 : vector<1x2x32xf32> to vector<2x32xf32>
    %c0_14 = arith.constant 0 : index
    %c0_15 = arith.constant 0 : index
    %c0_16 = arith.constant 0 : index
    %23 = vector.load %arg3[%c0_14, %c0_15, %c0_16] : memref<2x2x32xf32, #tpu.memory_space<vmem>>, vector<1x2x32xf32>
    %24 = vector.shape_cast %23 : vector<1x2x32xf32> to vector<2x32xf32>
    %25 = vector.extract_strided_slice %18 {offsets = [0, 0], sizes = [32, 128], strides = [1, 1]} : vector<64x128xf32> to vector<32x128xf32>
    %cst_17 = arith.constant dense<0.000000e+00> : vector<2x128xf32>
    %26 = tpu.matmul %16, %25, %cst_17 {dimension_numbers = #tpu.dot_dimension_numbers<[1], [0], [0], [1], [0, 0, 1, 1], [], []>} : vector<2x32xf32>, vector<32x128xf32>, vector<2x128xf32> -> vector<2x128xf32>
    %27 = vector.extract_strided_slice %18 {offsets = [32, 0], sizes = [32, 128], strides = [1, 1]} : vector<64x128xf32> to vector<32x128xf32>
    %cst_18 = arith.constant dense<0.000000e+00> : vector<2x128xf32>
    %28 = tpu.matmul %22, %27, %cst_18 {dimension_numbers = #tpu.dot_dimension_numbers<[1], [0], [0], [1], [0, 0, 1, 1], [], []>} : vector<2x32xf32>, vector<32x128xf32>, vector<2x128xf32> -> vector<2x128xf32>
    %29 = arith.addf %26, %28 : vector<2x128xf32>
    %30 = vector.broadcast %20 : vector<1x128xf32> to vector<2x128xf32>
    %31 = arith.addf %29, %30 : vector<2x128xf32>
    %32 = vector.extract_strided_slice %31 {offsets = [0, 0], sizes = [2, 96], strides = [1, 1]} : vector<2x128xf32> to vector<2x96xf32>
    %33 = arith.negf %32 : vector<2x96xf32>
    %34 = math.exp %33 : vector<2x96xf32>
    %cst_19 = arith.constant 1.000000e+00 : f32
    %35 = vector.broadcast %cst_19 : f32 to vector<2x96xf32>
    %36 = arith.addf %35, %34 : vector<2x96xf32>
    %37 = arith.divf %35, %36 : vector<2x96xf32>
    %38 = vector.extract_strided_slice %31 {offsets = [0, 96], sizes = [2, 32], strides = [1, 1]} : vector<2x128xf32> to vector<2x32xf32>
    %39 = math.tanh %38 : vector<2x32xf32>
    %40 = vector.extract_strided_slice %37 {offsets = [0, 0], sizes = [2, 32], strides = [1, 1]} : vector<2x96xf32> to vector<2x32xf32>
    %41 = vector.extract_strided_slice %37 {offsets = [0, 32], sizes = [2, 32], strides = [1, 1]} : vector<2x96xf32> to vector<2x32xf32>
    %42 = vector.extract_strided_slice %37 {offsets = [0, 64], sizes = [2, 32], strides = [1, 1]} : vector<2x96xf32> to vector<2x32xf32>
    %43 = arith.mulf %41, %24 : vector<2x32xf32>
    %44 = arith.mulf %40, %39 : vector<2x32xf32>
    %45 = arith.addf %43, %44 : vector<2x32xf32>
    %46 = math.tanh %45 : vector<2x32xf32>
    %47 = arith.mulf %42, %46 : vector<2x32xf32>
    %c0_20 = arith.constant 0 : index
    %c0_21 = arith.constant 0 : index
    %c0_22 = arith.constant 0 : index
    %48 = vector.load %arg8[%c0_20, %c0_21, %c0_22] : memref<2x2x32xf32, #tpu.memory_space<vmem>>, vector<1x2x32xf32>
    %49 = vector.shape_cast %48 : vector<1x2x32xf32> to vector<2x32xf32>
    %50 = vector.shape_cast %47 : vector<2x32xf32> to vector<1x2x32xf32>
    tpu.vector_store %arg8[%c0_20, %c0_21, %c0_22], %50 {strides = array<i32>} : memref<2x2x32xf32, #tpu.memory_space<vmem>>, vector<1x2x32xf32>,
    %c0_23 = arith.constant 0 : index
    %c0_24 = arith.constant 0 : index
    %c0_25 = arith.constant 0 : index
    %51 = vector.load %arg9[%c0_23, %c0_24, %c0_25] : memref<2x2x32xf32, #tpu.memory_space<vmem>>, vector<1x2x32xf32>
    %52 = vector.shape_cast %51 : vector<1x2x32xf32> to vector<2x32xf32>
    %53 = vector.shape_cast %45 : vector<2x32xf32> to vector<1x2x32xf32>
    tpu.vector_store %arg9[%c0_23, %c0_24, %c0_25], %53 {strides = array<i32>} : memref<2x2x32xf32, #tpu.memory_space<vmem>>, vector<1x2x32xf32>,
    %c1_26 = arith.constant 1 : index
    %c0_27 = arith.constant 0 : index
    %c0_28 = arith.constant 0 : index
    %54 = vector.load %arg4[%c1_26, %c0_27, %c0_28] : memref<2x64x128xf32, #tpu.memory_space<vmem>>, vector<1x64x128xf32>
    %55 = vector.shape_cast %54 : vector<1x64x128xf32> to vector<64x128xf32>
    %c1_29 = arith.constant 1 : index
    %c0_30 = arith.constant 0 : index
    %c0_31 = arith.constant 0 : index
    %56 = vector.load %arg5[%c1_29, %c0_30, %c0_31] : memref<2x1x128xf32, #tpu.memory_space<vmem>>, vector<1x1x128xf32>
    %57 = vector.shape_cast %56 : vector<1x1x128xf32> to vector<1x128xf32>
    %c1_32 = arith.constant 1 : index
    %c0_33 = arith.constant 0 : index
    %c0_34 = arith.constant 0 : index
    %58 = vector.load %arg2[%c1_32, %c0_33, %c0_34] : memref<2x2x32xf32, #tpu.memory_space<vmem>>, vector<1x2x32xf32>
    %59 = vector.shape_cast %58 : vector<1x2x32xf32> to vector<2x32xf32>
    %c1_35 = arith.constant 1 : index
    %c0_36 = arith.constant 0 : index
    %c0_37 = arith.constant 0 : index
    %60 = vector.load %arg3[%c1_35, %c0_36, %c0_37] : memref<2x2x32xf32, #tpu.memory_space<vmem>>, vector<1x2x32xf32>
    %61 = vector.shape_cast %60 : vector<1x2x32xf32> to vector<2x32xf32>
    %62 = vector.extract_strided_slice %55 {offsets = [0, 0], sizes = [32, 128], strides = [1, 1]} : vector<64x128xf32> to vector<32x128xf32>
    %cst_38 = arith.constant dense<0.000000e+00> : vector<2x128xf32>
    %63 = tpu.matmul %47, %62, %cst_38 {dimension_numbers = #tpu.dot_dimension_numbers<[1], [0], [0], [1], [0, 0, 1, 1], [], []>} : vector<2x32xf32>, vector<32x128xf32>, vector<2x128xf32> -> vector<2x128xf32>
    %64 = vector.extract_strided_slice %55 {offsets = [32, 0], sizes = [32, 128], strides = [1, 1]} : vector<64x128xf32> to vector<32x128xf32>
    %cst_39 = arith.constant dense<0.000000e+00> : vector<2x128xf32>
    %65 = tpu.matmul %59, %64, %cst_39 {dimension_numbers = #tpu.dot_dimension_numbers<[1], [0], [0], [1], [0, 0, 1, 1], [], []>} : vector<2x32xf32>, vector<32x128xf32>, vector<2x128xf32> -> vector<2x128xf32>
    %66 = arith.addf %63, %65 : vector<2x128xf32>
    %67 = vector.broadcast %57 : vector<1x128xf32> to vector<2x128xf32>
    %68 = arith.addf %66, %67 : vector<2x128xf32>
    %69 = vector.extract_strided_slice %68 {offsets = [0, 0], sizes = [2, 96], strides = [1, 1]} : vector<2x128xf32> to vector<2x96xf32>
    %70 = arith.negf %69 : vector<2x96xf32>
    %71 = math.exp %70 : vector<2x96xf32>
    %cst_40 = arith.constant 1.000000e+00 : f32
    %72 = vector.broadcast %cst_40 : f32 to vector<2x96xf32>
    %73 = arith.addf %72, %71 : vector<2x96xf32>
    %74 = arith.divf %72, %73 : vector<2x96xf32>
    %75 = vector.extract_strided_slice %68 {offsets = [0, 96], sizes = [2, 32], strides = [1, 1]} : vector<2x128xf32> to vector<2x32xf32>
    %76 = math.tanh %75 : vector<2x32xf32>
    %77 = vector.extract_strided_slice %74 {offsets = [0, 0], sizes = [2, 32], strides = [1, 1]} : vector<2x96xf32> to vector<2x32xf32>
    %78 = vector.extract_strided_slice %74 {offsets = [0, 32], sizes = [2, 32], strides = [1, 1]} : vector<2x96xf32> to vector<2x32xf32>
    %79 = vector.extract_strided_slice %74 {offsets = [0, 64], sizes = [2, 32], strides = [1, 1]} : vector<2x96xf32> to vector<2x32xf32>
    %80 = arith.mulf %78, %61 : vector<2x32xf32>
    %81 = arith.mulf %77, %76 : vector<2x32xf32>
    %82 = arith.addf %80, %81 : vector<2x32xf32>
    %83 = math.tanh %82 : vector<2x32xf32>
    %84 = arith.mulf %79, %83 : vector<2x32xf32>
    %c1_41 = arith.constant 1 : index
    %c0_42 = arith.constant 0 : index
    %c0_43 = arith.constant 0 : index
    %85 = vector.load %arg8[%c1_41, %c0_42, %c0_43] : memref<2x2x32xf32, #tpu.memory_space<vmem>>, vector<1x2x32xf32>
    %86 = vector.shape_cast %85 : vector<1x2x32xf32> to vector<2x32xf32>
    %87 = vector.shape_cast %84 : vector<2x32xf32> to vector<1x2x32xf32>
    tpu.vector_store %arg8[%c1_41, %c0_42, %c0_43], %87 {strides = array<i32>} : memref<2x2x32xf32, #tpu.memory_space<vmem>>, vector<1x2x32xf32>,
    %c1_44 = arith.constant 1 : index
    %c0_45 = arith.constant 0 : index
    %c0_46 = arith.constant 0 : index
    %88 = vector.load %arg9[%c1_44, %c0_45, %c0_46] : memref<2x2x32xf32, #tpu.memory_space<vmem>>, vector<1x2x32xf32>
    %89 = vector.shape_cast %88 : vector<1x2x32xf32> to vector<2x32xf32>
    %90 = vector.shape_cast %82 : vector<2x32xf32> to vector<1x2x32xf32>
    tpu.vector_store %arg9[%c1_44, %c0_45, %c0_46], %90 {strides = array<i32>} : memref<2x2x32xf32, #tpu.memory_space<vmem>>, vector<1x2x32xf32>,
    %c0_47 = arith.constant 0 : index
    %c0_48 = arith.constant 0 : index
    %91 = vector.load %arg6[%c0_47, %c0_48] : memref<33x16xf32, #tpu.memory_space<vmem>>, vector<33x16xf32>
    %92 = vector.extract_strided_slice %91 {offsets = [0, 0], sizes = [32, 16], strides = [1, 1]} : vector<33x16xf32> to vector<32x16xf32>
    %cst_49 = arith.constant dense<0.000000e+00> : vector<2x16xf32>
    %93 = tpu.matmul %84, %92, %cst_49 {dimension_numbers = #tpu.dot_dimension_numbers<[1], [0], [0], [1], [0, 0, 1, 1], [], []>} : vector<2x32xf32>, vector<32x16xf32>, vector<2x16xf32> -> vector<2x16xf32>
    %94 = vector.extract_strided_slice %91 {offsets = [32, 0], sizes = [1, 16], strides = [1, 1]} : vector<33x16xf32> to vector<1x16xf32>
    %95 = vector.broadcast %94 : vector<1x16xf32> to vector<2x16xf32>
    %96 = arith.addf %93, %95 : vector<2x16xf32>
    %c0_50 = arith.constant 0 : index
    %c0_51 = arith.constant 0 : index
    %97 = vector.load %arg7[%c0_50, %c0_51] : memref<2x16xf32, #tpu.memory_space<vmem>>, vector<2x16xf32>
    tpu.vector_store %arg7[%c0_50, %c0_51], %96 {strides = array<i32>} : memref<2x16xf32, #tpu.memory_space<vmem>>, vector<2x16xf32>,
    return
  }
}

</mosaic_0001>

<bundles_post_ra>
// kernel: simple_decoder_step.1
= control target key start
LH: loop header
LB: loop body
LE: loop exit
PB: predicated region body
PF: predicated region fallthrough
CT: control target
= control target key end

     0   :  { %15 = vsyncpa [#allocation5], 0  ;;  %s1206_s0 = inlined_call_operand.vmem [shape: s32[2], index: 0, kind: input, shape index: {}]   ;;  %s1207_s1 = inlined_call_operand.vmem [shape: f32[16,32], index: 1, kind: input, shape index: {}]   ;;  %s1208_s2 = inlined_call_operand.hbm [shape: f32[2,2,32], index: 2, kind: input, shape index: {}, may-alias: {2,8}]   ;;  %s1209_s3 = inlined_call_operand.hbm [shape: f32[2,2,32], index: 3, kind: input, shape index: {}, may-alias: {3,9}]   ;;  %s1210_s4 = inlined_call_operand.hbm [shape: f32[2,64,128], index: 4, kind: input, shape index: {}]   ;;  %s1211_s5 = inlined_call_operand.vmem [shape: f32[2,1,128], index: 5, kind: input, shape index: {}]   ;;  %s1212_s6 = inlined_call_operand.vmem [shape: f32[33,16], index: 6, kind: input, shape index: {}]   ;;  %s1213_s7 = inlined_call_operand.hbm [shape: f32[2,16], index: 7, kind: output, shape index: {0}]   ;;  %s1214_s8 = inlined_call_operand.hbm [shape: f32[2,2,32], index: 8, kind: output, shape index: {1}, may-alias: {2,8}]   ;;  %s1215_s9 = inlined_call_operand.hbm [shape: f32[2,2,32], index: 9, kind: output, shape index: {2}, may-alias: {3,9}]  }
   0x1   :  { %16 = vsyncpa [#allocation3], 0 }
   0x2   :  { %17 = vsyncpa [#allocation8], 0 }
   0x3   :  { %18 = vsyncpa [#allocation4], 0 }
   0x4   :  { %19 = vsyncpa [#allocation12], 0  ;;  %s26_s11 = sshll.u32 %s1206_s0, 4  ;;  %s972_s12 = smov [#allocation7]   ;;  %s27_s11 = int_to_ptr.vmem [resolvable:$true] %s26_s11 }
   0x5   :  { %s49_s13 = sshll.u32 %s972_s12, 4  ;;  %s818_s16 = scalar_lea.hbm %s1209_s3, 64  ;;  %s50_s13 = int_to_ptr.vmem [resolvable:$true] %s49_s13 }
   0x6   :  { %p819_p0 = scmp.ne.s32.totalorder %s1209_s3, %s818_s16  ;;  %p822_p1 = scmp.lt.u32.totalorder %s818_s16, %s1209_s3 }
   0x8   :  { %p824_p2 = pnand %p822_p1, %p819_p0 }
   0xa   :  { %827 = shalt.err (!%p824_p2)
}
   0xb   :  { %s828_s21 = scalar_lea.vmem %s50_s13, 64  ;;  %p833_p4 = scmp.lt.s32.totalorder %s50_s13, %s50_s13 }
   0xc   :  { %p829_p3 = scmp.ne.s32.totalorder %s50_s13, %s828_s21  ;;  %p834_p5 = scmp.lt.s32.totalorder %s828_s21, %s828_s21 }
   0xe   :  { %p835_p6 = por %p834_p5, %p833_p4 }
  0x10   :  { %p836_p7 = pnand %p835_p6, %p829_p3 }
  0x12   :  { %839 = shalt.err (!%p836_p7)
}
  0x13   :  { %s973_s0 = smov 32   ;;  %s974_s22 = smov 2  }
  0x14   :  { %55 = dma.hbm_to_vmem [thread:$0]  %s1209_s3, 64, %s50_s13, [#allocation8], %s973_s0, %s973_s0, %s974_s22  }
  0x15   :  { %s840_s25 = scalar_lea.vmem %s27_s11, 16  ;;  %p845_p9 = scmp.lt.s32.totalorder %s27_s11, %s27_s11 }
  0x16   :  { %p841_p8 = scmp.ne.s32.totalorder %s27_s11, %s840_s25  ;;  %p846_p10 = scmp.lt.s32.totalorder %s840_s25, %s840_s25 }
  0x18   :  { %p847_p11 = por %p846_p10, %p845_p9 }
  0x1a   :  { %p848_p12 = pnand %p847_p11, %p841_p8 }
  0x1c   :  { %851 = shalt.err (!%p848_p12)
}
  0x1d   :  { %s975_s26 = smov [#allocation2]   ;;  %s976_s27 = smov [#allocation6]  }
  0x1e   :  { %29 = dma.vmem_to_smem %s27_s11, 16, %s975_s26, [#allocation5]  }
  0x1f   :  { %s37_s28 = sshll.u32 %s976_s27, 4  ;;  %s977_s29 = smov [#allocation9]   ;;  %s38_s28 = int_to_ptr.vmem [resolvable:$true] %s37_s28 }
  0x20   :  { %s61_s30 = sshll.u32 %s977_s29, 4  ;;  %s852_s3 = scalar_lea.hbm %s1208_s2, 64  ;;  %s1056_s30 = int_to_ptr.vmem [resolvable:$true] %s61_s30 }
  0x21   :  { %p853_p13 = scmp.ne.s32.totalorder %s1208_s2, %s852_s3  ;;  %p856_p0 = scmp.lt.u32.totalorder %s852_s3, %s1208_s2 }
  0x23   :  { %p858_p1 = pnand %p856_p0, %p853_p13 }
  0x25   :  { %861 = shalt.err (!%p858_p1)
}
  0x26   :  { %s862_s11 = scalar_lea.vmem %s38_s28, 64  ;;  %p867_p3 = scmp.lt.s32.totalorder %s38_s28, %s38_s28 }
  0x27   :  { %p863_p2 = scmp.ne.s32.totalorder %s38_s28, %s862_s11  ;;  %p868_p4 = scmp.lt.s32.totalorder %s862_s11, %s862_s11 }
  0x29   :  { %p869_p5 = por %p868_p4, %p867_p3 }
  0x2b   :  { %p870_p6 = pnand %p869_p5, %p863_p2 }
  0x2d   :  { %873 = shalt.err (!%p870_p6)
}
  0x2e   :  { %43 = dma.hbm_to_vmem [thread:$0]  %s1208_s2, 64, %s38_s28, [#allocation3], %s973_s0, %s973_s0, %s974_s22  }
  0x2f   :  { %s874_s21 = scalar_lea.hbm %s1210_s4, 2048 }
  0x30   :  { %p875_p7 = scmp.ne.s32.totalorder %s1210_s4, %s874_s21  ;;  %p878_p8 = scmp.lt.u32.totalorder %s874_s21, %s1210_s4 }
  0x32   :  { %p880_p9 = pnand %p878_p8, %p875_p7 }
  0x34   :  { %883 = shalt.err (!%p880_p9)
}
  0x35   :  { %s884_s27 = scalar_lea.vmem %s1056_s30, 2048  ;;  %p889_p11 = scmp.lt.s32.totalorder %s1056_s30, %s1056_s30 }
  0x36   :  { %p885_p10 = scmp.ne.s32.totalorder %s1056_s30, %s884_s27  ;;  %p890_p12 = scmp.lt.s32.totalorder %s884_s27, %s884_s27 }
  0x38   :  { %p891_p13 = por %p890_p12, %p889_p11 }
  0x3a   :  { %p892_p0 = pnand %p891_p13, %p885_p10 }
  0x3c   :  { %895 = shalt.err (!%p892_p0)
}
  0x3d   :  { %s978_s2 = smov 128   ;;  %s979_s28 = smov 8  }
  0x3e   :  { %67 = dma.hbm_to_vmem [thread:$0]  %s1210_s4, 2048, %s1056_s30, [#allocation8], %s978_s2, %s978_s2, %s979_s28  }
  0x3f   :  { %962 = dma.done.wait [#allocation5], 16  }
  0x40   :  { %963 = vsyncadd [#allocation5], 4294967280 }
  0x41   :  { %964 = dma.done.wait [#allocation3], 64  }
  0x42   :  { %965 = vsyncadd [#allocation3], 4294967232 }
  0x43   :  { %966 = dma.done.wait [#allocation8], 2112  }
  0x44   :  { %967 = vsyncadd [#allocation8], 4294965184 }
  0x45   :  { %84 = sfence }
  0x46   :  { %v127_v0 = vld [vmem:[#allocation9 + $0x20] sm:$0xff]  ;;  %v128_v1 = vld [vmem:[#allocation9 + $0x28] sm:$0xff]  ;;  %v87_v3 = vlaneseq  ;;  %v980_v4 = vmov 0.0|0.0   ;;  %v129_v7 = vld [vmem:[#allocation9 + $0x30] sm:$0xff]  ;;  %s90_s4 = sld [smem:[#allocation2]]  ;;  %vm981_vm0 = vmmov 0  }
  0x47   :  { %v123_v2 = vld [vmem:[#allocation9] sm:$0xff]  ;;  %756 = vmatprep.subr.bf16.mxu0 %v980_v4  ;;  %v757_v5 = vpack.c.bf16 %v128_v1, %v127_v0  ;;  %762 = vmatprep.subr.bf16.mxu1 %v980_v4  ;;  %v124_v6 = vld [vmem:[#allocation9 + $0x8] sm:$0xff]  ;;  %v130_v8 = vld [vmem:[#allocation9 + $0x38] sm:$0xff]  ;;  %v982_v12 = vmov 0.0   ;;  %s664_s30 = sld [smem:[#allocation2 + $0x1]]  ;;  %vm96_vm1 = vcmask 261120  }
  0x48   :  { %v763_v9 = vpack.c.bf16 %v124_v6, %v123_v2  ;;  %v125_v10 = vld [vmem:[#allocation9 + $0x10] sm:$0xff]  ;;  %v126_v11 = vld [vmem:[#allocation9 + $0x18] sm:$0xff]  ;;  %709 = vmatprep.mubr.msk.f32.mxu0 %vm981_vm0, %v982_v12  ;;  %720 = vmatprep.mubr.msk.f32.mxu1 %vm981_vm0, %v982_v12  ;;  %v88_v13 = vshrl.u32 %v87_v3, 7  ;;  %v760_v14 = vpack.c.bf16 %v130_v8, %v129_v7  ;;  %v86_v18 = vld [vmem:[%s1207_s1 + $0x8] sm:$0xff]  ;;  %vm121_vm6 = vcmask 1040384   ;;  %s983_s16 = smov 64  }
  0x49   :  { %758 = vmatpush3.bf16.msra.mxu0 %v757_v5  ;;  %v766_v15 = vpack.c.bf16 %v126_v11, %v125_v10  ;;  %v85_v17 = vld [vmem:[%s1207_s1] sm:$0xff]  ;;  %v331_v0 = vld [vmem:[#allocation9 + $0x60] sm:$0xff]  ;;  %v332_v1 = vld [vmem:[#allocation9 + $0x68] sm:$0xff]  ;;  %vm319_vm7 = vcmask 254976   ;;  %s984_s26 = smov 96   ;;  %s985_s27 = smov [#allocation11]  }
  0x4a   :  { %764 = vmatpush3.bf16.msra.mxu1 %v763_v9  ;;  %759 = vmatprep.subr.bf16.mxu0 %v980_v4  ;;  %v89_v16 = vadd.s32 8, %v88_v13  ;;  %v132_v19 = vld [vmem:[#allocation6] sm:$0x3]  ;;  %v133_v53 = vld [vmem:[#allocation7] sm:$0x3]  ;;  %v327_v2 = vld [vmem:[#allocation9 + $0x40] sm:$0xff]  ;;  %v769_v3 = vpack.c.bf16 %v332_v1, %v331_v0 }
  0x4b   :  { %765 = vmatprep.subr.bf16.mxu1 %v980_v4  ;;  %v667_v47 = vld [vmem:[%s1211_s5] ss:$0 sm:$0xff]  ;;  %v328_v5 = vld [vmem:[#allocation9 + $0x48] sm:$0xff]  ;;  %v333_v6 = vld [vmem:[#allocation9 + $0x70] sm:$0xff]  ;;  %s631_s2 = sshll.u32 %s985_s27, 4  ;;  %s632_s2 = int_to_ptr.vmem [resolvable:$true] %s631_s2 }
  0x4c   :  { %v91_v20 = vstv %s90_s4  ;;  %v334_v7 = vld [vmem:[#allocation9 + $0x78] sm:$0xff]  ;;  %v775_v8 = vpack.c.bf16 %v328_v5, %v327_v2  ;;  %v329_v9 = vld [vmem:[#allocation9 + $0x50] sm:$0xff]  ;;  %s896_s28 = scalar_lea.vmem %s632_s2, 64  ;;  %p901_p2 = scmp.lt.s32.totalorder %s632_s2, %s632_s2 }
  0x4d   :  { %761 = vmatpush3.bf16.msra.mxu0 %v760_v14  ;;  %vm92_vm2 = vcmp.eq.s32.totalorder %v88_v13, %v91_v20  ;;  %vm93_vm3 = vcmp.eq.s32.totalorder %v89_v16, %v91_v20  ;;  %v107_v23 = vstv %s664_s30  ;;  %v330_v10 = vld [vmem:[#allocation9 + $0x58] sm:$0xff]  ;;  %v772_v11 = vpack.c.bf16 %v334_v7, %v333_v6  ;;  %p897_p1 = scmp.ne.s32.totalorder %s632_s2, %s896_s28  ;;  %p902_p3 = scmp.lt.s32.totalorder %s896_s28, %s896_s28 }
  0x4e   :  { %767 = vmatpush3.bf16.msra.mxu1 %v766_v15  ;;  %768 = vmatprep.subr.bf16.mxu0 %v980_v4  ;;  %v94_v21 = vsel %vm92_vm2, %v85_v17, 0.0  ;;  %v95_v22 = vsel %vm93_vm3, %v86_v18, 0.0  ;;  %vm108_vm4 = vcmp.eq.s32.totalorder %v88_v13, %v107_v23  ;;  %vm109_vm5 = vcmp.eq.s32.totalorder %v89_v16, %v107_v23  ;;  %v338_v14 = vld [vmem:[#allocation6 + $0x2] sm:$0x3] }
  0x4f   :  { %774 = vmatprep.subr.bf16.mxu1 %v980_v4  ;;  %v97_v24 = vsel %vm96_vm1, %v94_v21, 0.0  ;;  %v98_v25 = vsel %vm96_vm1, %v95_v22, 0.0  ;;  %v110_v27 = vsel %vm108_vm4, %v85_v17, 0.0  ;;  %v111_v28 = vsel %vm109_vm5, %v86_v18, 0.0  ;;  %v340_v18 = vld [vmem:[#allocation7 + $0x2] sm:$0x3]  ;;  %p903_p4 = por %p902_p3, %p901_p2 }
  0x50   :  { %710 = vmatmul.mubr.msk.f32.vlgmr.msra.gmra.mrb[0].mxu0 %vm96_vm1, %v132_v19  ;;  %v99_v26 = vadd.f32 %v98_v25, %v97_v24  ;;  %v112_v29 = vsel %vm96_vm1, %v110_v27, 0.0  ;;  %v113_v30 = vsel %vm96_vm1, %v111_v28, 0.0  ;;  %v778_v13 = vpack.c.bf16 %v330_v10, %v329_v9 }
  0x51   :  { %731 = vmatprep.mubr.msk.f32.mxu0 %vm981_vm0, %v982_v12  ;;  %v114_v32 = vadd.f32 %v113_v30, %v112_v29  ;;  %770 = vmatpush3.bf16.msra.mxu0 %v769_v3  ;;  %p904_p5 = pnand %p903_p4, %p897_p1 }
  0x52   :  { %v100_v31 = vrot.slane %v99_v26, 4  ;;  %771 = vmatprep.subr.bf16.mxu0 %v980_v4 }
  0x53   :  { %v115_v34 = vrot.slane %v114_v32, 4 }
  0x54   :  { %v101_v33 = vadd.f32 %v100_v31, %v99_v26 }
  0x55   :  { %v116_v36 = vadd.f32 %v115_v34, %v114_v32  ;;  %773 = vmatpush3.bf16.msra.mxu0 %v772_v11 }
  0x56   :  { %v102_v35 = vrot.slane %v101_v33, 2  ;;  %780 = vmatprep.subr.bf16.mxu0 %v980_v4 }
  0x57   :  { %v117_v38 = vrot.slane %v116_v36, 2 }
  0x58   :  { %v103_v37 = vadd.f32 %v102_v35, %v101_v33  ;;  %732 = vmatmul.mubr.msk.f32.vlgmr.msra.gmra.mrb[2].mxu0 %vm96_vm1, %v338_v14 }
  0x59   :  { %v118_v40 = vadd.f32 %v117_v38, %v116_v36  ;;  %753 = vmatprep.mubr.msk.f32.mxu0 %vm981_vm0, %v982_v12  ;;  %v534_v38 = vld [vmem:[%s1212_s6 + $0x8] sm:$0xff] }
  0x5a   :  { %v104_v39 = vrot.slane %v103_v37, 1 }
  0x5b   :  { %v119_v42 = vrot.slane %v118_v40, 1 }
  0x5c   :  { %v105_v41 = vadd.f32 %v104_v39, %v103_v37  ;;  %v533_v37 = vld [vmem:[%s1212_s6] sm:$0xff]  ;;  %v535_v39 = vld [vmem:[%s1212_s6 + $0x10] sm:$0xff] }
  0x5d   :  { %v120_v43 = vadd.f32 %v119_v42, %v118_v40  ;;  %v781_v40 = vpack.c.bf16 %v534_v38, %v533_v37 }
  0x5f   :  { %v122_v44 = vsel %vm121_vm6, %v105_v41, %v120_v43  ;;  %v536_v41 = vld [vmem:[%s1212_s6 + $0x18] sm:$0xff]  ;;  %782 = vmatpush3.bf16.msra.mxu0 %v781_v40 }
  0x60   :  { %721 = vmatmul.mubr.msk.f32.vlgmr.msra.gmra.mrb[0].mxu1 %vm96_vm1, %v122_v44  ;;  %v784_v42 = vpack.c.bf16 %v536_v41, %v535_v39  ;;  %783 = vmatprep.subr.bf16.mxu0 %v980_v4 }
  0x61   :  { %742 = vmatprep.mubr.msk.f32.mxu1 %vm981_vm0, %v982_v12  ;;  %776 = vmatpush3.bf16.msra.mxu1 %v775_v8  ;;  %v672_v12 = vld [vmem:[%s1211_s5 + $0x1] ss:$0 sm:$0xff] }
  0x62   :  { %777 = vmatprep.subr.bf16.mxu1 %v980_v4 }
  0x63   :  { %785 = vmatpush3.bf16.msra.mxu0 %v784_v42 }
  0x65   :  { %779 = vmatpush3.bf16.msra.mxu1 %v778_v13 }
 0x123   :  { %v203_v45 = vpop.f32.mrb[0].mxu0 }
 0x124   :  { %v711_v46 = vpop.f32.mrb[1].mxu0 }
 0x12b   :  { %v410_v19 = vpop.f32.mrb[2].mxu0 }
 0x12c   :  { %v733_v20 = vpop.f32.mrb[3].mxu0 }
 0x133   :  { %v276_v48 = vpop.f32.mrb[0].mxu1 }
 0x134   :  { %v277_v49 = vadd.f32 %v276_v48, %v203_v45  ;;  %v722_v50 = vpop.f32.mrb[1].mxu1 }
 0x136   :  { %v286_v51 = vadd.f32 %v667_v47, %v277_v49 }
 0x138   :  { %802 = vtanh.f32 %v286_v51  ;;  %v668_v54 = vmul.f32 -1.442695, %v286_v51 }
 0x13a   :  { %804 = vpow2.f32 %v668_v54 }
 0x142   :  { %v803_v52 = vpop.eup %802 }
 0x143   :  { %300 = vrot.lane.b32.xlu0 %v803_v52, %s973_s0 }
 0x144   :  { %v805_v55 = vpop.eup %804 }
 0x145   :  { %v290_v56 = vadd.f32 1.0, %v805_v55 }
 0x147   :  { %295 = vrot.lane.b32.xlu0 %v133_v53, %s973_s0  ;;  %806 = vrcp.f32 %v290_v56 }
 0x151   :  { %v807_v57 = vpop.eup %806 }
 0x1b5   :  { %v301_v58 = vpop.permute.xlu0 %300 }
 0x1b6   :  { %v303_v59 = vmul.f32 %v807_v57, %v301_v58 }
 0x1b8   :  { %305 = vrot.lane.b32.xlu1 %v303_v59, %s973_s0 }
 0x1b9   :  { %v296_v60 = vpop.permute.xlu0 %295 }
 0x1ba   :  { %v298_v61 = vmul.f32 %v807_v57, %v296_v60 }
 0x22a   :  { %v306_v62 = vpop.permute.xlu1 %305 }
 0x22b   :  { %v1122_v63 = vadd.f32 %v306_v62, %v298_v61 }
 0x22d   :  { %808 = vtanh.f32 %v1122_v63 }
 0x237   :  { %v809_v15 = vpop.eup %808 }
 0x238   :  { %311 = vrot.lane.b32.xlu1 %v809_v15, %s973_s0 }
 0x2aa   :  { %v312_v16 = vpop.permute.xlu1 %311 }
 0x2ab   :  { %v314_v17 = vmul.f32 %v807_v57, %v312_v16 }
 0x2ad   :  { %316 = vrot.lane.b32.xlu0 %v314_v17, %s983_s16 }
 0x2b1   :  { %501 = vrot.lane.b32.xlu0 %v340_v18, %s973_s0 }
 0x31f   :  { %v317_v21 = vpop.permute.xlu0 %316 }
 0x320   :  { %743 = vmatmul.mubr.msk.f32.vlgmr.msra.gmra.mrb[2].mxu1 %vm96_vm1, %v317_v21  ;;  %320 = vst.msk [vmem:[#allocation11] sm:$0x3] %vm319_vm7, %v317_v21 }
 0x323   :  { %v502_v33 = vpop.permute.xlu0 %501 }
 0x3f3   :  { %v482_v22 = vpop.f32.mrb[2].mxu1 }
 0x3f4   :  { %v483_v23 = vadd.f32 %v482_v22, %v410_v19  ;;  %v744_v24 = vpop.f32.mrb[3].mxu1 }
 0x3f6   :  { %v492_v25 = vadd.f32 %v672_v12, %v483_v23 }
 0x3f8   :  { %810 = vtanh.f32 %v492_v25  ;;  %v673_v27 = vmul.f32 -1.442695, %v492_v25 }
 0x3fa   :  { %812 = vpow2.f32 %v673_v27 }
 0x402   :  { %v811_v26 = vpop.eup %810 }
 0x403   :  { %506 = vrot.lane.b32.xlu1 %v811_v26, %s973_s0 }
 0x404   :  { %v813_v28 = vpop.eup %812 }
 0x405   :  { %v496_v29 = vadd.f32 1.0, %v813_v28 }
 0x407   :  { %814 = vrcp.f32 %v496_v29 }
 0x411   :  { %v815_v30 = vpop.eup %814 }
 0x412   :  { %v504_v34 = vmul.f32 %v815_v30, %v502_v33 }
 0x475   :  { %v507_v31 = vpop.permute.xlu1 %506 }
 0x476   :  { %v509_v32 = vmul.f32 %v815_v30, %v507_v31 }
 0x478   :  { %511 = vrot.lane.b32.xlu1 %v509_v32, %s973_s0 }
 0x4ea   :  { %v512_v35 = vpop.permute.xlu1 %511 }
 0x4eb   :  { %v514_v36 = vadd.f32 %v512_v35, %v504_v34 }
 0x4ed   :  { %816 = vtanh.f32 %v514_v36 }
 0x4f7   :  { %v817_v43 = vpop.eup %816 }
 0x4f8   :  { %517 = vrot.lane.b32.xlu0 %v817_v43, %s973_s0 }
 0x4fc   :  { %322 = vrot.lane.b32.xlu0 %v1122_v63, %s984_s26 }
 0x56a   :  { %v518_v44 = vpop.permute.xlu0 %517 }
 0x56b   :  { %v520_v45 = vmul.f32 %v815_v30, %v518_v44 }
 0x56d   :  { %522 = vrot.lane.b32.xlu1 %v520_v45, %s983_s16 }
 0x56e   :  { %v323_v46 = vpop.permute.xlu0 %322 }
 0x56f   :  { %325 = vst.msk [vmem:[#allocation13] sm:$0x3] %vm319_vm7, %v323_v46 }
 0x571   :  { %528 = vrot.lane.b32.xlu1 %v514_v36, %s984_s26 }
 0x5df   :  { %v523_v47 = vpop.permute.xlu1 %522 }
 0x5e0   :  { %526 = vst.msk [vmem:[#allocation11 + $0x2] sm:$0x3] %vm319_vm7, %v523_v47  ;;  %754 = vmatmul.mubr.msk.f32.vlgmr.msra.gmra.mrb[4].mxu0 %vm96_vm1, %v523_v47 }
 0x5e3   :  { %v529_v4 = vpop.permute.xlu1 %528 }
 0x5e4   :  { %532 = vst.msk [vmem:[#allocation13 + $0x2] sm:$0x3] %vm319_vm7, %v529_v4 }
 0x5e5   :  { %907 = shalt.err (!%p904_p5)
}
 0x5e6   :  { %s908_s4 = scalar_lea.hbm %s1214_s8, 64 }
 0x5e7   :  { %p909_p6 = scmp.ne.s32.totalorder %s1214_s8, %s908_s4  ;;  %p912_p7 = scmp.lt.u32.totalorder %s908_s4, %s1214_s8 }
 0x5e9   :  { %p914_p8 = pnand %p912_p7, %p909_p6 }
 0x5eb   :  { %917 = shalt.err (!%p914_p8)
}
 0x5ec   :  { %637 = dma.vmem_to_hbm [thread:$0]  %s632_s2, 64, %s1214_s8, [#allocation12], %s973_s0, %s973_s0, %s974_s22  }
 0x5ed   :  { %s986_s15 = smov [#allocation13]  }
 0x5ee   :  { %s643_s16 = sshll.u32 %s986_s15, 4  ;;  %s644_s16 = int_to_ptr.vmem [resolvable:$true] %s643_s16 }
 0x5ef   :  { %s918_s11 = scalar_lea.vmem %s644_s16, 64  ;;  %p923_p10 = scmp.lt.s32.totalorder %s644_s16, %s644_s16 }
 0x5f0   :  { %p919_p9 = scmp.ne.s32.totalorder %s644_s16, %s918_s11  ;;  %p924_p11 = scmp.lt.s32.totalorder %s918_s11, %s918_s11 }
 0x5f2   :  { %p925_p12 = por %p924_p11, %p923_p10 }
 0x5f4   :  { %p926_p13 = pnand %p925_p12, %p919_p9 }
 0x5f6   :  { %929 = shalt.err (!%p926_p13)
}
 0x5f7   :  { %s930_s18 = scalar_lea.hbm %s1215_s9, 64 }
 0x5f8   :  { %p931_p0 = scmp.ne.s32.totalorder %s1215_s9, %s930_s18  ;;  %p934_p1 = scmp.lt.u32.totalorder %s930_s18, %s1215_s9 }
 0x5fa   :  { %p936_p2 = pnand %p934_p1, %p931_p0 }
 0x5fc   :  { %939 = shalt.err (!%p936_p2)
}
 0x5fd   :  { %649 = dma.vmem_to_hbm [thread:$0]  %s644_s16, 64, %s1215_s9, [#allocation12], %s973_s0, %s973_s0, %s974_s22   ;;  %vm614_vm8 = vcmask 123904  }
 0x5fe   :  { %v674_v48 = vld [vmem:[%s1212_s6 + $0x20] ss:$0 sm:$0xff]  ;;  %s987_s27 = smov [#allocation10]  }
 0x5ff   :  { %s622_s2 = sshll.u32 %s987_s27, 4  ;;  %s623_s2 = int_to_ptr.vmem [resolvable:$true] %s622_s2 }
 0x600   :  { %s940_s28 = scalar_lea.vmem %s623_s2, 32  ;;  %p945_p4 = scmp.lt.s32.totalorder %s623_s2, %s623_s2 }
 0x601   :  { %p941_p3 = scmp.ne.s32.totalorder %s623_s2, %s940_s28  ;;  %p946_p5 = scmp.lt.s32.totalorder %s940_s28, %s940_s28 }
 0x603   :  { %p947_p6 = por %p946_p5, %p945_p4 }
 0x605   :  { %p948_p7 = pnand %p947_p6, %p941_p3 }
 0x6b3   :  { %v610_v49 = vpop.f32.mrb[4].mxu0 }
 0x6b4   :  { %v611_v50 = vadd.f32 %v674_v48, %v610_v49  ;;  %v755_v51 = vpop.f32.mrb[5].mxu0 }
 0x6b6   :  { %615 = vst.msk [vmem:[#allocation10] sm:$0x3] %vm614_vm8, %v611_v50 }
 0x6b7   :  { %951 = shalt.err (!%p948_p7)
}
 0x6b8   :  { %s952_s22 = scalar_lea.hbm %s1213_s7, 32 }
 0x6b9   :  { %p953_p8 = scmp.ne.s32.totalorder %s1213_s7, %s952_s22  ;;  %p956_p9 = scmp.lt.u32.totalorder %s952_s22, %s1213_s7 }
 0x6bb   :  { %p958_p10 = pnand %p956_p9, %p953_p8 }
 0x6bd   :  { %961 = shalt.err (!%p958_p10)
}
 0x6be   :  { %625 = dma.vmem_to_hbm [thread:$0]  %s623_s2, 32, %s1213_s7, [#allocation4]  }
 0x6bf   :  { %968 = dma.done.wait [#allocation4], 32  }
 0x6c0   :  { %969 = vsyncadd [#allocation4], 4294967264 }
 0x6c1   :  { %970 = dma.done.wait [#allocation12], 128  }
 0x6c2   :  { %971 = vsyncadd [#allocation12], 4294967168 }
 0x6c3   :  { %659 = vsyncpa [#allocation3], 1 }
 0x6c4   :  { %660 = vsyncpa [#allocation8], 1 }
 0x6c5   :  { %661 = vsyncpa [#allocation4], 1 }
 0x6c6   :  { %662 = vsyncpa [#allocation12], 1 }
 0x6c7   :  { %663 = vsyncpa [#allocation5], 1 }

</bundles_post_ra>
